<compile_context>
chip_gen: v6e
topology: v6e:2x2x1
jax: 0.10.0
libtpu: 0.0.40
codegen_flags: <defaults>
</compile_context>

<pallas_src>
import jax
import jax.numpy as jnp
from jax.experimental import pallas as pl
from jax.experimental.pallas import tpu as pltpu

IN_FEATURES = 28 * 28   # 784
HIDDEN = 15
HIDDEN_PAD = 128        # pad hidden dim to one full lane width
OUT_FEATURES = 10
DEFAULT_TB = 2048       # bf16 batch tile: 2 x (2048*784*2B) ~= 6.4 MiB double-buffered


def _mlp_kernel(x_ref, w1_ref, b1_ref, w2_ref, b2_ref, o_ref):
    # Fused Linear(784->128pad) + ReLU + Linear(128pad->10) on one batch tile.
    x = x_ref[...]                                                  # (TB, 784) bf16
    h = jnp.dot(x, w1_ref[...],
                preferred_element_type=jnp.float32)                 # (TB, 128) f32
    h = jnp.maximum(h + b1_ref[...], 0.0)                           # bias + ReLU (f32)
    logits = jnp.dot(h, w2_ref[...],
                     preferred_element_type=jnp.float32) + b2_ref[...]  # (TB, 10) f32
    o_ref[...] = logits.astype(o_ref.dtype)


def _round_up(n, m):
    return (n + m - 1) // m * m


def prepare_params(w1, b1, w2, b2):
    """Pad/cast weights once (hoisted out of the per-call forward path).

    w1: (784, 15), b1: (1, 15) or (15,), w2: (15, 10), b2: (1, 10) or (10,)
    (weights stored transposed vs torch so the kernel computes x @ W + b).
    """
    w1p = jnp.pad(jnp.asarray(w1, jnp.float32),
                  ((0, 0), (0, HIDDEN_PAD - HIDDEN))).astype(jnp.bfloat16)   # (784, 128) bf16
    b1p = jnp.pad(jnp.asarray(b1, jnp.float32).reshape(1, HIDDEN),
                  ((0, 0), (0, HIDDEN_PAD - HIDDEN)))                        # (1, 128) f32
    w2p = jnp.pad(jnp.asarray(w2, jnp.float32),
                  ((0, HIDDEN_PAD - HIDDEN), (0, 0)))                        # (128, 10) f32
    b2p = jnp.asarray(b2, jnp.float32).reshape(1, OUT_FEATURES)              # (1, 10) f32
    return w1p, b1p, w2p, b2p


def red_neuronal_forward(x_nchw, params, *, tb=DEFAULT_TB):
    """Forward pass of RedNeuronal.

    x_nchw : (B, 1, 28, 28) float-like
    params : output of prepare_params()
    returns: (B, 10) float32 logits
    """
    w1p, b1p, w2p, b2p = params
    B = x_nchw.shape[0]
    # nn.Flatten() on NCHW == row-major reshape; stream activations as bf16.
    x_flat = x_nchw.reshape(B, IN_FEATURES).astype(jnp.bfloat16)

    # Tight tile selection: at most `tb` rows/tile, >= 2 tiles for large B so
    # v7x's two TensorCores both get work; tile rows are a multiple of 8.
    n_tiles = max(pl.cdiv(B, tb), 1)
    if B > 16 and n_tiles < 2:
        n_tiles = 2
    tb_eff = _round_up(pl.cdiv(B, n_tiles), 8)
    grid = (pl.cdiv(B, tb_eff),)   # ragged last block: reads padded, stores masked

    rows = grid[0] * tb_eff
    flops = 2 * rows * IN_FEATURES * HIDDEN_PAD + 2 * rows * HIDDEN_PAD * OUT_FEATURES
    bytes_accessed = (2 * B * IN_FEATURES            # x (bf16)
                      + 4 * B * OUT_FEATURES         # logits (f32)
                      + 2 * IN_FEATURES * HIDDEN_PAD # w1 (bf16)
                      + 4 * HIDDEN_PAD               # b1
                      + 4 * HIDDEN_PAD * OUT_FEATURES
                      + 4 * OUT_FEATURES)

    out = pl.pallas_call(
        _mlp_kernel,
        out_shape=jax.ShapeDtypeStruct((B, OUT_FEATURES), jnp.float32),
        grid=grid,
        in_specs=[
            # Streamed activation tile (double-buffered by Pallas).
            pl.BlockSpec((tb_eff, IN_FEATURES), lambda i: (i, 0)),
            # VMEM-resident weights/biases: constant block index, single buffer.
            pl.BlockSpec((IN_FEATURES, HIDDEN_PAD), lambda i: (0, 0),
                         pipeline_mode=pl.Buffered(1)),
            pl.BlockSpec((1, HIDDEN_PAD), lambda i: (0, 0),
                         pipeline_mode=pl.Buffered(1)),
            pl.BlockSpec((HIDDEN_PAD, OUT_FEATURES), lambda i: (0, 0),
                         pipeline_mode=pl.Buffered(1)),
            pl.BlockSpec((1, OUT_FEATURES), lambda i: (0, 0),
                         pipeline_mode=pl.Buffered(1)),
        ],
        out_specs=pl.BlockSpec((tb_eff, OUT_FEATURES), lambda i: (i, 0)),
        compiler_params=pltpu.CompilerParams(
            dimension_semantics=("parallel",),       # shard batch tiles over v7x's 2 TCs
            vmem_limit_bytes=32 * 1024 * 1024,       # explicit headroom (v5e 16 MiB default)
        ),
        cost_estimate=pl.CostEstimate(
            flops=flops, transcendentals=0, bytes_accessed=bytes_accessed),
    )(x_flat, w1p, b1p, w2p, b2p)

    return out


def init_params(key):
    """Deterministic init mimicking PyTorch's default Linear init
    (uniform(-1/sqrt(fan_in), 1/sqrt(fan_in)))."""
    k1, k2, k3, k4 = jax.random.split(key, 4)
    bound1 = 1.0 / jnp.sqrt(jnp.float32(IN_FEATURES))
    bound2 = 1.0 / jnp.sqrt(jnp.float32(HIDDEN))
    w1 = jax.random.uniform(k1, (IN_FEATURES, HIDDEN), jnp.float32,
                            minval=-bound1, maxval=bound1)
    b1 = jax.random.uniform(k2, (1, HIDDEN), jnp.float32,
                            minval=-bound1, maxval=bound1)
    w2 = jax.random.uniform(k3, (HIDDEN, OUT_FEATURES), jnp.float32,
                            minval=-bound2, maxval=bound2)
    b2 = jax.random.uniform(k4, (1, OUT_FEATURES), jnp.float32,
                            minval=-bound2, maxval=bound2)
    return w1, b1, w2, b2


if __name__ == "__main__":
    key = jax.random.PRNGKey(0)
    k_x, k_p = jax.random.split(key)

    B = 2
    x = jax.random.normal(k_x, (B, 1, 28, 28), dtype=jnp.float32)  # MNIST-like NCHW
    w1, b1, w2, b2 = init_params(k_p)
    params = prepare_params(w1, b1, w2, b2)   # pad/cast once (hoisted)

    logits = red_neuronal_forward(x, params)
    logits = jax.block_until_ready(logits)
    assert logits.shape == (B, OUT_FEATURES)

    # Reference 1: same bf16 streaming + f32 accumulation as the kernel (tight).
    xf = x.reshape(B, -1)
    h_ref = jnp.dot(xf.astype(jnp.bfloat16), w1.astype(jnp.bfloat16),
                    preferred_element_type=jnp.float32) + b1
    ref_bf16 = jnp.dot(jnp.maximum(h_ref, 0.0), w2,
                       preferred_element_type=jnp.float32) + b2
    assert jnp.allclose(logits, ref_bf16, atol=1e-4, rtol=1e-4)

    # Reference 2: pure-f32 PyTorch-equivalent forward (looser: bf16 input rounding).
    ref_f32 = jnp.maximum(xf @ w1 + b1, 0.0) @ w2 + b2
    assert jnp.allclose(logits, ref_f32, atol=5e-2, rtol=5e-2)

    print("KERNEL_OK")
</pallas_src>

<mosaic_0001>
module attributes {stable_mosaic.version = 11 : i64} {
  func.func @_mlp_kernel(%arg0: i32, %arg1: memref<8x784xbf16, #tpu.memory_space<vmem>>, %arg2: memref<784x128xbf16, #tpu.memory_space<vmem>>, %arg3: memref<1x128xf32, #tpu.memory_space<vmem>>, %arg4: memref<128x10xf32, #tpu.memory_space<vmem>>, %arg5: memref<1x10xf32, #tpu.memory_space<vmem>>, %arg6: memref<8x10xf32, #tpu.memory_space<vmem>>) attributes {dimension_semantics = [#tpu.dimension_semantics<parallel>], iteration_bounds = array<i64: 1>, scalar_prefetch = 0 : i64, scratch_operands = 0 : i64, tpu.core_type = #tpu.core_type<tc>, window_params = [{transform_indices = @transform_0, window_bounds = array<i64: 8, 784>}, {pipeline_mode = #tpu.pipeline_mode<synchronous>, transform_indices = @transform_1, window_bounds = array<i64: 784, 128>}, {pipeline_mode = #tpu.pipeline_mode<synchronous>, transform_indices = @transform_2, window_bounds = array<i64: 1, 128>}, {pipeline_mode = #tpu.pipeline_mode<synchronous>, transform_indices = @transform_3, window_bounds = array<i64: 128, 10>}, {pipeline_mode = #tpu.pipeline_mode<synchronous>, transform_indices = @transform_4, window_bounds = array<i64: 1, 10>}, {transform_indices = @transform_5, window_bounds = array<i64: 8, 10>}]} {
    %c0 = arith.constant 0 : index
    %c0_0 = arith.constant 0 : index
    %0 = vector.load %arg1[%c0, %c0_0] : memref<8x784xbf16, #tpu.memory_space<vmem>>, vector<8x784xbf16>
    %c0_1 = arith.constant 0 : index
    %c0_2 = arith.constant 0 : index
    %1 = vector.load %arg2[%c0_1, %c0_2] : memref<784x128xbf16, #tpu.memory_space<vmem>>, vector<784x128xbf16>
    %cst = arith.constant dense<0.000000e+00> : vector<8x128xf32>
    %2 = tpu.matmul %0, %1, %cst {dimension_numbers = #tpu.dot_dimension_numbers<[1], [0], [0], [1], [0, 0, 1, 1], [], []>} : vector<8x784xbf16>, vector<784x128xbf16>, vector<8x128xf32> -> vector<8x128xf32>
    %c0_3 = arith.constant 0 : index
    %c0_4 = arith.constant 0 : index
    %3 = vector.load %arg3[%c0_3, %c0_4] : memref<1x128xf32, #tpu.memory_space<vmem>>, vector<1x128xf32>
    %4 = vector.broadcast %3 : vector<1x128xf32> to vector<8x128xf32>
    %5 = arith.addf %2, %4 : vector<8x128xf32>
    %cst_5 = arith.constant 0.000000e+00 : f32
    %6 = vector.broadcast %cst_5 : f32 to vector<8x128xf32>
    %7 = arith.maximumf %5, %6 : vector<8x128xf32>
    %c0_6 = arith.constant 0 : index
    %c0_7 = arith.constant 0 : index
    %8 = vector.load %arg4[%c0_6, %c0_7] : memref<128x10xf32, #tpu.memory_space<vmem>>, vector<128x10xf32>
    %cst_8 = arith.constant dense<0.000000e+00> : vector<8x10xf32>
    %9 = tpu.matmul %7, %8, %cst_8 {dimension_numbers = #tpu.dot_dimension_numbers<[1], [0], [0], [1], [0, 0, 1, 1], [], []>} : vector<8x128xf32>, vector<128x10xf32>, vector<8x10xf32> -> vector<8x10xf32>
    %c0_9 = arith.constant 0 : index
    %c0_10 = arith.constant 0 : index
    %10 = vector.load %arg5[%c0_9, %c0_10] : memref<1x10xf32, #tpu.memory_space<vmem>>, vector<1x10xf32>
    %11 = vector.broadcast %10 : vector<1x10xf32> to vector<8x10xf32>
    %12 = arith.addf %9, %11 : vector<8x10xf32>
    %c0_11 = arith.constant 0 : index
    %c0_12 = arith.constant 0 : index
    %13 = vector.load %arg6[%c0_11, %c0_12] : memref<8x10xf32, #tpu.memory_space<vmem>>, vector<8x10xf32>
    tpu.vector_store %arg6[%c0_11, %c0_12], %12 {strides = array<i32>} : memref<8x10xf32, #tpu.memory_space<vmem>>, vector<8x10xf32>,
    return
  }
  func.func @transform_0(%arg0: i32) -> (i32, i32) {
    %c0_i32 = arith.constant 0 : i32
    %c0_i32_0 = arith.constant 0 : i32
    return %arg0, %c0_i32 : i32, i32
  }
  func.func @transform_1(%arg0: i32) -> (i32, i32) {
    %c0_i32 = arith.constant 0 : i32
    %c0_i32_0 = arith.constant 0 : i32
    %c0_i32_1 = arith.constant 0 : i32
    return %c0_i32, %c0_i32_0 : i32, i32
  }
  func.func @transform_2(%arg0: i32) -> (i32, i32) {
    %c0_i32 = arith.constant 0 : i32
    %c0_i32_0 = arith.constant 0 : i32
    %c0_i32_1 = arith.constant 0 : i32
    return %c0_i32, %c0_i32_0 : i32, i32
  }
  func.func @transform_3(%arg0: i32) -> (i32, i32) {
    %c0_i32 = arith.constant 0 : i32
    %c0_i32_0 = arith.constant 0 : i32
    %c0_i32_1 = arith.constant 0 : i32
    return %c0_i32, %c0_i32_0 : i32, i32
  }
  func.func @transform_4(%arg0: i32) -> (i32, i32) {
    %c0_i32 = arith.constant 0 : i32
    %c0_i32_0 = arith.constant 0 : i32
    %c0_i32_1 = arith.constant 0 : i32
    return %c0_i32, %c0_i32_0 : i32, i32
  }
  func.func @transform_5(%arg0: i32) -> (i32, i32) {
    %c0_i32 = arith.constant 0 : i32
    %c0_i32_0 = arith.constant 0 : i32
    return %arg0, %c0_i32 : i32, i32
  }
}

</mosaic_0001>

<bundles_post_ra>
// kernel: tpu_custom_call.1
= control target key start
LH: loop header
LB: loop body
LE: loop exit
PB: predicated region body
PF: predicated region fallthrough
CT: control target
= control target key end

     0   :  { %10 = vsyncpa [#allocation3], 0  ;;  %s1211_s0 = inlined_call_operand.vmem [shape: bf16[2,784], index: 0, kind: input, shape index: {}]   ;;  %s1212_s1 = inlined_call_operand.hbm [shape: bf16[784,128], index: 1, kind: input, shape index: {}]   ;;  %s1213_s2 = inlined_call_operand.vmem [shape: f32[1,128], index: 2, kind: input, shape index: {}]   ;;  %s1214_s3 = inlined_call_operand.vmem [shape: f32[128,10], index: 3, kind: input, shape index: {}]   ;;  %s1215_s4 = inlined_call_operand.vmem [shape: f32[1,10], index: 4, kind: input, shape index: {}]   ;;  %s1216_s5 = inlined_call_operand.hbm [shape: f32[2,10], index: 5, kind: output, shape index: {}]  }
   0x1   :  { %11 = vsyncpa [#allocation4], 0  ;;  %s1079_s18 = smov [#allocation2]  }
   0x2   :  { %s19_s19 = sshll.u32 %s1079_s18, 4  ;;  %s20_s19 = int_to_ptr.vmem [resolvable:$true] %s19_s19 }
   0x3   :  { %s1043_s20 = scalar_lea.vmem %s20_s19, 6272  ;;  %p1048_p1 = scmp.lt.s32.totalorder %s20_s19, %s20_s19 }
   0x4   :  { %p1044_p0 = scmp.ne.s32.totalorder %s20_s19, %s1043_s20  ;;  %p1049_p2 = scmp.lt.s32.totalorder %s1043_s20, %s1043_s20 }
   0x6   :  { %p1050_p3 = por %p1049_p2, %p1048_p1 }
   0x8   :  { %p1051_p4 = pnand %p1050_p3, %p1044_p0 }
   0xa   :  { %1054 = shalt.err (!%p1051_p4)
}
   0xb   :  { %s1080_s21 = smov 64   ;;  %s1081_s22 = smov 4  }
   0xc   :  { %25 = dma.hbm_to_vmem [thread:$0]  %s1212_s1, 6272, %s20_s19, [#allocation3], %s1080_s21, %s1080_s21, %s1081_s22  }
   0xd   :  { %1075 = dma.done.wait [#allocation3], 6272  }
   0xe   :  { %1076 = vsyncadd [#allocation3], 4294961024  ;;  %v980_v0 = vld [vmem:[#allocation2 + $0x78] sm:$0xff]   ;;  %v984_v4 = vld [vmem:[#allocation2 + $0x70] sm:$0xff]   ;;  %v1082_v23 = vmov 1966171168   ;;  %v156_v25 = vlaneseq }
   0xf   :  { %v981_v1 = vld [vmem:[#allocation2 + $0x38] sm:$0xff]   ;;  %845 = vmatprep.subr.bf16.mxu0 %v980_v0  ;;  %v985_v5 = vld [vmem:[#allocation2 + $0x30] sm:$0xff]   ;;  %v988_v8 = vld [vmem:[#allocation2 + $0x68] sm:$0xff]   ;;  %v154_v24 = vunpack.c.l.s4 %v1082_v23  ;;  %v1083_v49 = vmov 0.0   ;;  %vm1084_vm0 = vmmov 0   ;;  %vm516_vm1 = vcmask 130048  }
  0x10   :  { %v982_v2 = vld [vmem:[#allocation2 + $0xf8] sm:$0xff]   ;;  %846 = vmatpush3.bf16.msra.mxu0 %v981_v1  ;;  %v986_v6 = vld [vmem:[#allocation2 + $0xf0] sm:$0xff]   ;;  %v989_v9 = vld [vmem:[#allocation2 + $0x28] sm:$0xff]   ;;  %v157_v31 = vshrl.u32 %v156_v25, 7  ;;  %vm774_vm2 = vcmask 80896  }
  0x11   :  { %v983_v3 = vld [vmem:[#allocation2 + $0xb8] sm:$0xff]   ;;  %867 = vmatprep.subr.bf16.mxu1 %v982_v2  ;;  %847 = vmatprep.subr.bf16.mxu0 %v984_v4  ;;  %v987_v7 = vld [vmem:[#allocation2 + $0xb0] sm:$0xff]   ;;  %v990_v10 = vld [vmem:[#allocation2 + $0xe8] sm:$0xff]   ;;  %v155_v30 = vunpack.c.0.s8 %v154_v24 }
  0x12   :  { %868 = vmatpush3.bf16.msra.mxu1 %v983_v3  ;;  %v991_v11 = vld [vmem:[#allocation2 + $0xa8] sm:$0xff]   ;;  %v992_v12 = vld [vmem:[#allocation2 + $0x60] sm:$0xff]   ;;  %v996_v16 = vld [vmem:[#allocation2 + $0x58] sm:$0xff]  }
  0x13   :  { %869 = vmatprep.subr.bf16.mxu1 %v986_v6  ;;  %v993_v13 = vld [vmem:[#allocation2 + $0x20] sm:$0xff]   ;;  %v997_v17 = vld [vmem:[#allocation2 + $0x18] sm:$0xff]   ;;  %v1000_v20 = vld [vmem:[#allocation2 + $0x50] sm:$0xff]   ;;  %v158_v36 = vsub.s32 %v155_v30, %v157_v31 }
  0x14   :  { %848 = vmatpush3.bf16.msra.mxu0 %v985_v5  ;;  %v994_v14 = vld [vmem:[#allocation2 + $0xe0] sm:$0xff]   ;;  %v998_v18 = vld [vmem:[#allocation2 + $0xd8] sm:$0xff]   ;;  %v1001_v21 = vld [vmem:[#allocation2 + $0x10] sm:$0xff]  }
  0x15   :  { %849 = vmatprep.subr.bf16.mxu0 %v988_v8  ;;  %v995_v15 = vld [vmem:[#allocation2 + $0xa0] sm:$0xff]   ;;  %v999_v19 = vld [vmem:[#allocation2 + $0x98] sm:$0xff]   ;;  %v1002_v22 = vld [vmem:[#allocation2 + $0xd0] sm:$0xff]  }
  0x16   :  { %870 = vmatpush3.bf16.msra.mxu1 %v987_v7  ;;  %v1003_v26 = vld [vmem:[#allocation2 + $0x90] sm:$0xff]   ;;  %v1004_v27 = vld [vmem:[#allocation2 + $0x48] sm:$0xff]   ;;  %v1008_v33 = vld [vmem:[#allocation2 + $0x40] sm:$0xff]  }
  0x17   :  { %871 = vmatprep.subr.bf16.mxu1 %v990_v10  ;;  %v1005_v28 = vld [vmem:[#allocation2 + $0x8] sm:$0xff]   ;;  %v1009_v34 = vld [vmem:[#allocation2] sm:$0xff]   ;;  %v1016_v40 = vld [vmem:[%s1211_s0 + $0x12] ss:$7 sps:$4 sm:$0x77]  }
  0x18   :  { %850 = vmatpush3.bf16.msra.mxu0 %v989_v9  ;;  %v1006_v29 = vld [vmem:[#allocation2 + $0xc8] sm:$0xff]   ;;  %v1010_v35 = vld [vmem:[#allocation2 + $0xc0] sm:$0xff]   ;;  %v1018_v44 = vld [vmem:[#allocation2 + $0x178] sm:$0xff]   ;;  %v180_v46 = vrot.slane %v1016_v40, %v158_v36 }
  0x19   :  { %851 = vmatprep.subr.bf16.mxu0 %v992_v12  ;;  %v1007_v32 = vld [vmem:[#allocation2 + $0x88] sm:$0xff]   ;;  %v1017_v43 = vld [vmem:[#allocation2 + $0x80] sm:$0xff]   ;;  %v1019_v53 = vld [vmem:[#allocation2 + $0x138] sm:$0xff]  }
  0x1a   :  { %872 = vmatpush3.bf16.msra.mxu1 %v991_v11  ;;  %v1011_v37 = vld [vmem:[%s1211_s0] ss:$7 sps:$4 sm:$0xff]   ;;  %v1014_v38 = vld [vmem:[%s1211_s0 + $0xe] ss:$7 sps:$4 sm:$0xff]  }
  0x1b   :  { %873 = vmatprep.subr.bf16.mxu1 %v994_v14  ;;  %v1013_v39 = vld [vmem:[%s1211_s0 + $0x4] ss:$7 sps:$4 sm:$0x77]   ;;  %v159_v41 = vrot.slane %v1011_v37, %v158_v36  ;;  %v173_v42 = vrot.slane %v1014_v38, %v158_v36  ;;  %v1020_v54 = vld [vmem:[#allocation2 + $0x170] sm:$0xff]   ;;  %v1026_v1 = vld [vmem:[#allocation2 + $0x158] sm:$0xff]  }
  0x1c   :  { %852 = vmatpush3.bf16.msra.mxu0 %v993_v13  ;;  %v166_v45 = vrot.slane %v1013_v39, %v158_v36  ;;  %v1021_v58 = vld [vmem:[#allocation2 + $0x130] sm:$0xff]   ;;  %v1022_v59 = vld [vmem:[#allocation2 + $0x168] sm:$0xff]   ;;  %v1024_v62 = vld [vmem:[#allocation2 + $0x160] sm:$0xff]  }
  0x1d   :  { %853 = vmatprep.subr.bf16.mxu0 %v996_v16  ;;  %v182_v47 = vcombine.high %v159_v41, %v173_v42  ;;  %v181_v48 = vcombine.low %v159_v41, %v173_v42  ;;  %v1023_v61 = vld [vmem:[#allocation2 + $0x128] sm:$0xff]   ;;  %v1025_v0 = vld [vmem:[#allocation2 + $0x120] sm:$0xff]   ;;  %v1027_v4 = vld [vmem:[#allocation2 + $0x118] sm:$0xff]  }
  0x1e   :  { %874 = vmatpush3.bf16.msra.mxu1 %v995_v15  ;;  %v184_v50 = vcombine.high %v166_v45, %v180_v46  ;;  %v183_v60 = vcombine.low %v166_v45, %v180_v46  ;;  %v1034_v2 = vld [vmem:[#allocation2 + $0x180] sm:$0xff]   ;;  %v1028_v5 = vld [vmem:[#allocation2 + $0x150] sm:$0xff]   ;;  %v1030_v7 = vld [vmem:[#allocation2 + $0x148] sm:$0xff]  }
  0x1f   :  { %875 = vmatprep.subr.bf16.mxu1 %v998_v18  ;;  %v205_v51 = vrot.slane %v182_v47, %v158_v36  ;;  %v191_v52 = vrot.slane %v181_v48, %v158_v36  ;;  %v1029_v6 = vld [vmem:[#allocation2 + $0x110] sm:$0xff]   ;;  %v1031_v8 = vld [vmem:[#allocation2 + $0x108] sm:$0xff]   ;;  %v1032_v9 = vld [vmem:[#allocation2 + $0x140] sm:$0xff]  }
  0x20   :  { %854 = vmatpush3.bf16.msra.mxu0 %v997_v17  ;;  %v212_v57 = vrot.slane %v184_v50, %v158_v36  ;;  %v198_v63 = vrot.slane %v183_v60, %v158_v36  ;;  %v1033_v10 = vld [vmem:[#allocation2 + $0x100] sm:$0xff]   ;;  %v696_v11 = vld [vmem:[%s1214_s3 + $0x78] sm:$0xff]  ;;  %v695_v12 = vld [vmem:[%s1214_s3 + $0x70] sm:$0xff] }
  0x21   :  { %855 = vmatprep.subr.bf16.mxu0 %v1000_v20  ;;  %552 = vmatprep.mubr.bf16.mxu0 %v205_v51  ;;  %v215_v55 = vcombine.high %v205_v51, %v205_v51  ;;  %v213_v56 = vcombine.high %v191_v52, %v191_v52  ;;  %v694_v13 = vld [vmem:[%s1214_s3 + $0x68] sm:$0xff]  ;;  %v693_v14 = vld [vmem:[%s1214_s3 + $0x60] sm:$0xff]  ;;  %v692_v15 = vld [vmem:[%s1214_s3 + $0x58] sm:$0xff] }
  0x22   :  { %876 = vmatpush3.bf16.msra.mxu1 %v999_v19  ;;  %v214_v3 = vcombine.high %v198_v63, %v198_v63  ;;  %v691_v16 = vld [vmem:[%s1214_s3 + $0x50] sm:$0xff]  ;;  %v690_v17 = vld [vmem:[%s1214_s3 + $0x48] sm:$0xff]  ;;  %v689_v18 = vld [vmem:[%s1214_s3 + $0x40] sm:$0xff] }
  0x23   :  { %877 = vmatprep.subr.bf16.mxu1 %v1002_v22  ;;  %592 = vmatprep.mubr.bf16.mxu1 %v215_v55  ;;  %v688_v19 = vld [vmem:[%s1214_s3 + $0x38] sm:$0xff]  ;;  %v687_v20 = vld [vmem:[%s1214_s3 + $0x30] sm:$0xff]  ;;  %v685_v22 = vld [vmem:[%s1214_s3 + $0x20] sm:$0xff] }
  0x24   :  { %856 = vmatpush3.bf16.msra.mxu0 %v1001_v21  ;;  %v686_v21 = vld [vmem:[%s1214_s3 + $0x28] sm:$0xff]  ;;  %v684_v23 = vld [vmem:[%s1214_s3 + $0x18] sm:$0xff]  ;;  %v683_v24 = vld [vmem:[%s1214_s3 + $0x10] sm:$0xff] }
  0x25   :  { %857 = vmatprep.subr.bf16.mxu0 %v1004_v27  ;;  %v682_v25 = vld [vmem:[%s1214_s3 + $0x8] sm:$0xff]  ;;  %v793_v40 = vld [vmem:[%s1213_s2] ss:$0 sm:$0xff] }
  0x26   :  { %878 = vmatpush3.bf16.msra.mxu1 %v1003_v26  ;;  %v681_v26 = vld [vmem:[%s1214_s3] sm:$0xff] }
  0x27   :  { %879 = vmatprep.subr.bf16.mxu1 %v1006_v29 }
  0x28   :  { %858 = vmatpush3.bf16.msra.mxu0 %v1005_v28 }
  0x29   :  { %859 = vmatprep.subr.bf16.mxu0 %v1008_v33 }
  0x2a   :  { %880 = vmatpush3.bf16.msra.mxu1 %v1007_v32 }
  0x2b   :  { %881 = vmatprep.subr.bf16.mxu1 %v1010_v35 }
  0x2c   :  { %860 = vmatpush3.bf16.msra.mxu0 %v1009_v34 }
  0x2d   :  { %889 = vmatprep.subr.bf16.mxu0 %v1018_v44 }
  0x2e   :  { %882 = vmatpush3.bf16.msra.mxu1 %v1017_v43 }
  0x2f   :  { %930 = vmatprep.subr.bf16.mxu1 %v1083_v49  ;;  %553 = vmatmul.mubr.bf16.vlgmr.msra.gmra.mxu0 %v191_v52  ;;  %v844_v52 = vld [vmem:[%s1215_s4] ss:$0 sm:$0xff] }
  0x30   :  { %890 = vmatpush3.bf16.msra.mxu0 %v1019_v53  ;;  %632 = vmatprep.mubr.bf16.mxu0 %v212_v57 }
  0x31   :  { %593 = vmatmul.mubr.bf16.vlgmr.msra.gmra.mxu1 %v213_v56  ;;  %891 = vmatprep.subr.bf16.mxu0 %v1020_v54 }
  0x32   :  { %932 = vmatprep.mubr.msk.bf16.mxu1 %vm1084_vm0, %v1083_v49  ;;  %931 = vmatpush3.bf16.msra.mxu1 %v1034_v2 }
  0x33   :  { %936 = vmatprep.subr.mxu1 %v1083_v49 }
  0x34   :  { %892 = vmatpush3.bf16.msra.mxu0 %v1021_v58 }
  0x35   :  { %893 = vmatprep.subr.bf16.mxu0 %v1022_v59 }
  0x38   :  { %894 = vmatpush3.bf16.msra.mxu0 %v1023_v61 }
  0x39   :  { %895 = vmatprep.subr.bf16.mxu0 %v1024_v62  ;;  %933 = vmatmul.mubr.msk.bf16.vlgmr.msra.gmra.mxu1 %vm516_vm1, %v214_v3 }
  0x3a   :  { %968 = vmatprep.mubr.msk.f32.mxu1 %vm1084_vm0, %v1083_v49  ;;  %937 = vmatpush3.msra.mxu1 %v696_v11 }
  0x3b   :  { %938 = vmatprep.subr.mxu1 %v1083_v49 }
  0x3c   :  { %896 = vmatpush3.bf16.msra.mxu0 %v1025_v0  ;;  %939 = vmatpush3.msra.mxu1 %v695_v12 }
  0x3d   :  { %897 = vmatprep.subr.bf16.mxu0 %v1026_v1  ;;  %940 = vmatprep.subr.mxu1 %v1083_v49 }
  0x3e   :  { %941 = vmatpush3.msra.mxu1 %v694_v13 }
  0x3f   :  { %942 = vmatprep.subr.mxu1 %v1083_v49 }
  0x40   :  { %898 = vmatpush3.bf16.msra.mxu0 %v1027_v4  ;;  %943 = vmatpush3.msra.mxu1 %v693_v14 }
  0x41   :  { %899 = vmatprep.subr.bf16.mxu0 %v1028_v5  ;;  %944 = vmatprep.subr.mxu1 %v1083_v49 }
  0x42   :  { %945 = vmatpush3.msra.mxu1 %v692_v15 }
  0x43   :  { %946 = vmatprep.subr.mxu1 %v1083_v49 }
  0x44   :  { %900 = vmatpush3.bf16.msra.mxu0 %v1029_v6  ;;  %947 = vmatpush3.msra.mxu1 %v691_v16 }
  0x45   :  { %901 = vmatprep.subr.bf16.mxu0 %v1030_v7  ;;  %948 = vmatprep.subr.mxu1 %v1083_v49 }
  0x46   :  { %949 = vmatpush3.msra.mxu1 %v690_v17 }
  0x47   :  { %950 = vmatprep.subr.mxu1 %v1083_v49 }
  0x48   :  { %902 = vmatpush3.bf16.msra.mxu0 %v1031_v8  ;;  %951 = vmatpush3.msra.mxu1 %v689_v18 }
  0x49   :  { %903 = vmatprep.subr.bf16.mxu0 %v1032_v9  ;;  %952 = vmatprep.subr.mxu1 %v1083_v49 }
  0x4a   :  { %953 = vmatpush3.msra.mxu1 %v688_v19 }
  0x4b   :  { %954 = vmatprep.subr.mxu1 %v1083_v49 }
  0x4c   :  { %904 = vmatpush3.bf16.msra.mxu0 %v1033_v10  ;;  %955 = vmatpush3.msra.mxu1 %v687_v20 }
  0x4d   :  { %956 = vmatprep.subr.mxu1 %v1083_v49 }
  0x4e   :  { %957 = vmatpush3.msra.mxu1 %v686_v21 }
  0x4f   :  { %633 = vmatmul.mubr.bf16.vlgmr.msra.gmra.mxu0 %v198_v63  ;;  %958 = vmatprep.subr.mxu1 %v1083_v49 }
  0x50   :  { %959 = vmatpush3.msra.mxu1 %v685_v22 }
  0x51   :  { %960 = vmatprep.subr.mxu1 %v1083_v49 }
  0x52   :  { %961 = vmatpush3.msra.mxu1 %v684_v23 }
  0x53   :  { %962 = vmatprep.subr.mxu1 %v1083_v49 }
  0x54   :  { %963 = vmatpush3.msra.mxu1 %v683_v24 }
  0x55   :  { %964 = vmatprep.subr.mxu1 %v1083_v49 }
  0x56   :  { %965 = vmatpush3.msra.mxu1 %v682_v25 }
  0x57   :  { %966 = vmatprep.subr.mxu1 %v1083_v49 }
  0x58   :  { %967 = vmatpush3.msra.mxu1 %v681_v26 }
  0xef   :  { %v861_v27 = vpop.f32.mrf.mxu0 }
  0xf1   :  { %v862_v28 = vpop.f32.mrf.mxu0  ;;  %v883_v29 = vpop.f32.mrf.mxu1 }
  0xf2   :  { %v863_v39 = vadd.f32 %v862_v28, %v861_v27 }
  0xf3   :  { %v864_v30 = vpop.f32.mrf.mxu0  ;;  %v884_v31 = vpop.f32.mrf.mxu1 }
  0xf4   :  { %v555_v41 = vadd.f32 %v863_v39, %v793_v40  ;;  %v885_v42 = vadd.f32 %v884_v31, %v883_v29 }
  0xf5   :  { %v865_v32 = vpop.f32.mrf.mxu0  ;;  %v886_v33 = vpop.f32.mrf.mxu1 }
  0xf6   :  { %v595_v45 = vadd.f32 %v885_v42, %v555_v41 }
  0xf7   :  { %v887_v34 = vpop.f32.mrf.mxu1 }
  0xf9   :  { %v674_v35 = vpop.f32.mrf.mxu1 }
  0xfb   :  { %v934_v36 = vpop.f32.mrf.mxu1 }
  0xfd   :  { %v677_v37 = vpop.f32.mrf.mxu1 }
  0xff   :  { %v935_v38 = vpop.f32.mrf.mxu1 }
 0x10f   :  { %v905_v43 = vpop.f32.mrf.mxu0 }
 0x111   :  { %v906_v44 = vpop.f32.mrf.mxu0 }
 0x112   :  { %v907_v46 = vadd.f32 %v906_v44, %v905_v43 }
 0x113   :  { %v908_v47 = vpop.f32.mrf.mxu0 }
 0x114   :  { %v635_v48 = vadd.f32 %v907_v46, %v595_v45 }
 0x115   :  { %v909_v49 = vpop.f32.mrf.mxu0 }
 0x116   :  { %v675_v50 = vadd.f32 %v674_v35, %v635_v48 }
 0x118   :  { %v680_v51 = vmax.f32 %v675_v50, 0.0 }
 0x11a   :  { %969 = vmatmul.mubr.f32.vlgmr.msra.gmra.mxu1 %v680_v51 }
 0x1da   :  { %v770_v53 = vpop.f32.mrf.mxu1 }
 0x1db   :  { %v771_v54 = vadd.f32 %v844_v52, %v770_v53 }
 0x1dc   :  { %v970_v55 = vpop.f32.mrf.mxu1 }
 0x1dd   :  { %775 = vst.msk [vmem:[#allocation5] sm:$0xff] %vm774_vm2, %v771_v54 }
 0x1de   :  { %780 = vsyncadd [#allocation4], 96  ;;  %s1085_s2 = smov [#allocation5]  }
 0x1df   :  { %s781_s14 = sshll.u32 %s1085_s2, 4  ;;  %s782_s14 = int_to_ptr.vmem [resolvable:$true] %s781_s14 }
 0x1e0   :  { %s1055_s15 = scalar_lea.vmem %s782_s14, 32  ;;  %s1059_s16 = scalar_lea.vmem %s782_s14, 128 }
 0x1e1   :  { %p1056_p5 = scmp.ne.s32.totalorder %s782_s14, %s1055_s15  ;;  %p1060_p6 = scmp.lt.s32.totalorder %s782_s14, %s782_s14 }
 0x1e2   :  { %p1061_p7 = scmp.lt.s32.totalorder %s1059_s16, %s1055_s15 }
 0x1e4   :  { %p1062_p8 = por %p1061_p7, %p1060_p6 }
 0x1e6   :  { %p1063_p9 = pnand %p1062_p8, %p1056_p5 }
 0x1e8   :  { %1066 = shalt.err (!%p1063_p9)
}
 0x1e9   :  { %s1086_s17 = smov 32   ;;  %s1087_s18 = smov 2  }
 0x1ea   :  { %787 = dma.vmem_to_hbm [thread:$0]  %s782_s14, 32, %s1216_s5, [#allocation4], %s1086_s17, %s1086_s17, %s1087_s18  }
 0x1eb   :  { %1077 = dma.done.wait [#allocation4], 128  }
 0x1ec   :  { %1078 = vsyncadd [#allocation4], 4294967168 }
 0x1ed   :  { %791 = vsyncpa [#allocation3], 1 }
 0x1ee   :  { %792 = vsyncpa [#allocation4], 1 }

</bundles_post_ra>
